<compile_context>
chip_gen: v6e
topology: v6e:2x2x1
jax: 0.10.0
libtpu: 0.0.40
codegen_flags: <defaults>
</compile_context>

<pallas_src>
import jax
import jax.numpy as jnp
from jax.experimental import pallas as pl
from jax.experimental.pallas import tpu as pltpu


def _softmax_kernel(x_ref, o_ref):
    # Numerically stable softmax over the last axis of the current tile.
    x = x_ref[...]
    if x.dtype != jnp.float32:
        x = x.astype(jnp.float32)
    m = jnp.max(x, axis=-1, keepdims=True)
    e = jnp.exp(x - m)
    s = jnp.sum(e, axis=-1, keepdims=True)
    inv = pl.reciprocal(s, approx=False)   # EUP, frees VPU divide slots
    o_ref[...] = (e * inv).astype(o_ref.dtype)


def softmax(x, *, vmem_budget_bytes=16 * 1024 * 1024, max_row_tile=1024):
    """Softmax over the last axis of a 2D array (B, F) == PyTorch dim=1."""
    B, F = x.shape
    assert B >= 1 and F >= 1

    # --- lane-dense feature axis: pad F up to a multiple of 128 with -inf ---
    Fp = pl.cdiv(F, 128) * 128
    if Fp != F:
        pad = jnp.full((B, Fp - F), -jnp.inf, dtype=x.dtype)
        xin = jnp.concatenate([x, pad], axis=1)
    else:
        xin = x

    # --- row-tile sizing from a VMEM budget -------------------------------
    # Pipeline footprint per row: double-buffered input + output tiles in the
    # element dtype, plus ~2 live f32 temporaries inside the kernel.
    elem_bytes = jnp.dtype(x.dtype).itemsize
    per_row_bytes = 4 * Fp * elem_bytes + 2 * Fp * 4
    tm = (vmem_budget_bytes // per_row_bytes) // 8 * 8
    tm = int(max(8, min(max_row_tile, tm)))

    # Keep >= 2 grid steps when the batch is big enough (v7x: 2 TCs/chip).
    if B > 8 and tm >= B:
        tm = max(8, ((pl.cdiv(B, 2) + 7) // 8) * 8)

    # Never exceed the batch; a block equal to the full dim is always legal.
    tm = min(tm, B)

    grid = (pl.cdiv(B, tm),)

    out = pl.pallas_call(
        _softmax_kernel,
        out_shape=jax.ShapeDtypeStruct((B, Fp), x.dtype),
        grid_spec=pltpu.PrefetchScalarGridSpec(
            num_scalar_prefetch=0,
            grid=grid,
            in_specs=[pl.BlockSpec((tm, Fp), lambda i: (i, 0))],
            out_specs=pl.BlockSpec((tm, Fp), lambda i: (i, 0)),
        ),
        compiler_params=pltpu.CompilerParams(
            dimension_semantics=("parallel",),
            # Explicit limit: raises v5e's 16 MiB default, stays well inside
            # v7x's 64 MiB physical VMEM (actual usage bounded by the budget).
            vmem_limit_bytes=32 * 1024 * 1024,
        ),
    )(xin)

    if Fp != F:
        out = out[:, :F]
    return out


if __name__ == "__main__":
    key = jax.random.PRNGKey(0)

    # Shape consistent with the module's FDAF fusion path:
    # fusion_out = cat(DenseNet 1024-d, ViT 768-d) -> 1792 features, softmax
    # over dim=1.  Small batch for the demo.
    B, F = 8, 1792
    x = jax.random.normal(key, (B, F), dtype=jnp.float32)

    y = softmax(x)
    y = jax.block_until_ready(y)

    y_ref = jax.nn.softmax(x, axis=1)
    assert jnp.allclose(y, y_ref, atol=1e-6, rtol=1e-6), "mismatch vs reference"
    assert jnp.allclose(jnp.sum(y, axis=1), 1.0, atol=1e-5), "rows must sum to 1"

    # Secondary check: non-multiple-of-128 features and non-multiple-of-8 batch
    # exercises the lane-padding path and the full-dim (partial) block path.
    x2 = jax.random.normal(jax.random.PRNGKey(1), (5, 96), dtype=jnp.float32)
    y2 = jax.block_until_ready(softmax(x2))
    y2_ref = jax.nn.softmax(x2, axis=1)
    assert jnp.allclose(y2, y2_ref, atol=1e-6, rtol=1e-6), "mismatch (padded F)"

    print("KERNEL_OK")
</pallas_src>

<mosaic_0001>
module attributes {stable_mosaic.version = 11 : i64} {
  func.func @_softmax_kernel(%arg0: i32, %arg1: memref<8x1792xf32, #tpu.memory_space<vmem>>, %arg2: memref<8x1792xf32, #tpu.memory_space<vmem>>) attributes {dimension_semantics = [#tpu.dimension_semantics<parallel>], iteration_bounds = array<i64: 1>, scalar_prefetch = 0 : i64, scratch_operands = 0 : i64, tpu.core_type = #tpu.core_type<tc>, window_params = [{transform_indices = @transform_0, window_bounds = array<i64: 8, 1792>}, {transform_indices = @transform_1, window_bounds = array<i64: 8, 1792>}]} {
    %c0 = arith.constant 0 : index
    %c0_0 = arith.constant 0 : index
    %0 = vector.load %arg1[%c0, %c0_0] : memref<8x1792xf32, #tpu.memory_space<vmem>>, vector<8x1792xf32>
    %cst = arith.constant dense<0xFF800000> : vector<8xf32>
    %1 = vector.multi_reduction <maximumf>, %0, %cst [1] : vector<8x1792xf32> to vector<8xf32>
    %2 = vector.shape_cast %1 : vector<8xf32> to vector<8x1xf32>
    %3 = vector.broadcast %2 : vector<8x1xf32> to vector<8x1792xf32>
    %4 = arith.subf %0, %3 : vector<8x1792xf32>
    %5 = math.exp %4 : vector<8x1792xf32>
    %cst_1 = arith.constant dense<0.000000e+00> : vector<8xf32>
    %6 = vector.multi_reduction <add>, %5, %cst_1 [1] : vector<8x1792xf32> to vector<8xf32>
    %7 = vector.shape_cast %6 : vector<8xf32> to vector<8x1xf32>
    %8 = tpu.reciprocal %7 : vector<8x1xf32> -> vector<8x1xf32>
    %9 = vector.broadcast %8 : vector<8x1xf32> to vector<8x1792xf32>
    %10 = arith.mulf %5, %9 : vector<8x1792xf32>
    %c0_2 = arith.constant 0 : index
    %c0_3 = arith.constant 0 : index
    %11 = vector.load %arg2[%c0_2, %c0_3] : memref<8x1792xf32, #tpu.memory_space<vmem>>, vector<8x1792xf32>
    tpu.vector_store %arg2[%c0_2, %c0_3], %10 {strides = array<i32>} : memref<8x1792xf32, #tpu.memory_space<vmem>>, vector<8x1792xf32>,
    return
  }
  func.func @transform_0(%arg0: i32) -> (i32, i32) {
    %c0_i32 = arith.constant 0 : i32
    %c0_i32_0 = arith.constant 0 : i32
    return %arg0, %c0_i32 : i32, i32
  }
  func.func @transform_1(%arg0: i32) -> (i32, i32) {
    %c0_i32 = arith.constant 0 : i32
    %c0_i32_0 = arith.constant 0 : i32
    return %arg0, %c0_i32 : i32, i32
  }
}

</mosaic_0001>

<bundles_post_ra>
// kernel: tpu_custom_call.1
= control target key start
LH: loop header
LB: loop body
LE: loop exit
PB: predicated region body
PF: predicated region fallthrough
CT: control target
= control target key end

     0   :  { %6 = vsyncpa [#allocation3], 0  ;;  %s245_s0 = inlined_call_operand.hbm [shape: f32[8,1792], index: 0, kind: input, shape index: {}]   ;;  %s246_s1 = inlined_call_operand.hbm [shape: f32[8,1792], index: 1, kind: output, shape index: {}]  }
   0x1   :  { %7 = vsyncpa [#allocation4], 0  ;;  %s227_s6 = smov [#allocation2]  }
   0x2   :  { %s14_s7 = sshll.u32 %s227_s6, 4  ;;  %s15_s7 = int_to_ptr.vmem [resolvable:$true] %s14_s7 }
   0x3   :  { %s191_s8 = scalar_lea.vmem %s15_s7, 1792  ;;  %p196_p1 = scmp.lt.s32.totalorder %s15_s7, %s15_s7 }
   0x4   :  { %p192_p0 = scmp.ne.s32.totalorder %s15_s7, %s191_s8  ;;  %p197_p2 = scmp.lt.s32.totalorder %s191_s8, %s191_s8 }
   0x6   :  { %p198_p3 = por %p197_p2, %p196_p1 }
   0x8   :  { %p199_p4 = pnand %p198_p3, %p192_p0 }
   0xa   :  { %202 = shalt.err (!%p199_p4)
}
   0xb   :  { %17 = dma.hbm_to_vmem [thread:$0]  %s245_s0, 1792, %s15_s7, [#allocation3]  }
   0xc   :  { %223 = dma.done.wait [#allocation3], 1792  }
   0xd   :  { %224 = vsyncadd [#allocation3], 4294965504  ;;  %v21_v0 = vld [vmem:[#allocation2] sm:$0xff]  ;;  %v22_v1 = vld [vmem:[#allocation2 + $0x8] sm:$0xff]  ;;  %s228_s0 = smov [#allocation5]  }
   0xe   :  { %v23_v2 = vld [vmem:[#allocation2 + $0x10] sm:$0xff]  ;;  %v24_v3 = vld [vmem:[#allocation2 + $0x18] sm:$0xff]  ;;  %v25_v4 = vld [vmem:[#allocation2 + $0x20] sm:$0xff]  ;;  %s142_s11 = sshll.u32 %s228_s0, 4  ;;  %s143_s11 = int_to_ptr.vmem [resolvable:$true] %s142_s11 }
   0xf   :  { %v26_v5 = vld [vmem:[#allocation2 + $0x28] sm:$0xff]  ;;  %v27_v6 = vld [vmem:[#allocation2 + $0x30] sm:$0xff]  ;;  %v28_v7 = vld [vmem:[#allocation2 + $0x38] sm:$0xff]  ;;  %v35_v9 = vmax.f32 %v21_v0, %v25_v4  ;;  %s203_s12 = scalar_lea.vmem %s143_s11, 1792  ;;  %p208_p6 = scmp.lt.s32.totalorder %s143_s11, %s143_s11 }
  0x10   :  { %v29_v8 = vld [vmem:[#allocation2 + $0x40] sm:$0xff]  ;;  %v36_v10 = vmax.f32 %v22_v1, %v26_v5  ;;  %v30_v11 = vld [vmem:[#allocation2 + $0x48] sm:$0xff]  ;;  %v31_v12 = vld [vmem:[#allocation2 + $0x50] sm:$0xff]  ;;  %v37_v14 = vmax.f32 %v23_v2, %v27_v6  ;;  %v38_v15 = vmax.f32 %v24_v3, %v28_v7  ;;  %p204_p5 = scmp.ne.s32.totalorder %s143_s11, %s203_s12  ;;  %p209_p7 = scmp.lt.s32.totalorder %s203_s12, %s203_s12 }
  0x11   :  { %v32_v13 = vld [vmem:[#allocation2 + $0x58] sm:$0xff]  ;;  %v33_v16 = vld [vmem:[#allocation2 + $0x60] sm:$0xff]  ;;  %v34_v17 = vld [vmem:[#allocation2 + $0x68] sm:$0xff]  ;;  %v39_v18 = vmax.f32 %v35_v9, %v29_v8 }
  0x12   :  { %v40_v19 = vmax.f32 %v36_v10, %v30_v11  ;;  %v41_v20 = vmax.f32 %v37_v14, %v31_v12  ;;  %v42_v21 = vmax.f32 %v38_v15, %v32_v13  ;;  %p210_p8 = por %p209_p7, %p208_p6 }
  0x13   :  { %v43_v22 = vmax.f32 %v39_v18, %v33_v16 }
  0x14   :  { %v44_v23 = vmax.f32 %v40_v19, %v34_v17  ;;  %v46_v24 = vmax.f32 %v41_v20, %v42_v21  ;;  %p211_p9 = pnand %p210_p8, %p204_p5 }
  0x16   :  { %v45_v25 = vmax.f32 %v43_v22, %v44_v23 }
  0x18   :  { %v47_v26 = vmax.f32 %v45_v25, %v46_v24 }
  0x1a   :  { %48 = vmax.xlane.f32.xlu0 %v47_v26 }
  0xa3   :  { %v49_v27 = vpop.xlane.xlu0 %48 }
  0xa4   :  { %v50_v28 = vsub.f32 %v21_v0, %v49_v27  ;;  %v51_v29 = vsub.f32 %v22_v1, %v49_v27  ;;  %v52_v30 = vsub.f32 %v23_v2, %v49_v27  ;;  %v53_v31 = vsub.f32 %v24_v3, %v49_v27 }
  0xa5   :  { %v54_v34 = vsub.f32 %v25_v4, %v49_v27  ;;  %v55_v36 = vsub.f32 %v26_v5, %v49_v27  ;;  %v56_v38 = vsub.f32 %v27_v6, %v49_v27  ;;  %v57_v40 = vsub.f32 %v28_v7, %v49_v27 }
  0xa6   :  { %v64_v32 = vmul.f32 1.442695, %v50_v28  ;;  %v66_v33 = vmul.f32 1.442695, %v51_v29  ;;  %v68_v35 = vmul.f32 1.442695, %v52_v30  ;;  %v58_v42 = vsub.f32 %v29_v8, %v49_v27 }
  0xa7   :  { %v70_v37 = vmul.f32 1.442695, %v53_v31  ;;  %v72_v39 = vmul.f32 1.442695, %v54_v34  ;;  %v74_v41 = vmul.f32 1.442695, %v55_v36  ;;  %v59_v44 = vsub.f32 %v30_v11, %v49_v27 }
  0xa8   :  { %153 = vpow2.f32 %v64_v32  ;;  %v76_v43 = vmul.f32 1.442695, %v56_v38  ;;  %v78_v45 = vmul.f32 1.442695, %v57_v40  ;;  %v60_v46 = vsub.f32 %v31_v12, %v49_v27 }
  0xa9   :  { %155 = vpow2.f32 %v66_v33  ;;  %v80_v47 = vmul.f32 1.442695, %v58_v42  ;;  %v61_v49 = vsub.f32 %v32_v13, %v49_v27  ;;  %v82_v50 = vmul.f32 1.442695, %v59_v44 }
  0xaa   :  { %157 = vpow2.f32 %v68_v35  ;;  %v62_v52 = vsub.f32 %v33_v16, %v49_v27  ;;  %v84_v53 = vmul.f32 1.442695, %v60_v46  ;;  %v63_v56 = vsub.f32 %v34_v17, %v49_v27 }
  0xab   :  { %159 = vpow2.f32 %v70_v37  ;;  %v86_v57 = vmul.f32 1.442695, %v61_v49 }
  0xac   :  { %161 = vpow2.f32 %v72_v39  ;;  %v88_v60 = vmul.f32 1.442695, %v62_v52  ;;  %v90_v63 = vmul.f32 1.442695, %v63_v56 }
  0xad   :  { %163 = vpow2.f32 %v74_v41 }
  0xae   :  { %165 = vpow2.f32 %v76_v43 }
  0xaf   :  { %167 = vpow2.f32 %v78_v45 }
  0xb0   :  { %169 = vpow2.f32 %v80_v47 }
  0xb1   :  { %171 = vpow2.f32 %v82_v50 }
  0xb2   :  { %173 = vpow2.f32 %v84_v53 }
  0xb3   :  { %175 = vpow2.f32 %v86_v57 }
  0xb4   :  { %177 = vpow2.f32 %v88_v60 }
  0xb5   :  { %v154_v48 = vpop.eup %153  ;;  %179 = vpow2.f32 %v90_v63 }
  0xb6   :  { %v156_v51 = vpop.eup %155 }
  0xb7   :  { %v92_v54 = vadd.f32 %v156_v51, %v154_v48  ;;  %v158_v55 = vpop.eup %157 }
  0xb8   :  { %v160_v59 = vpop.eup %159 }
  0xb9   :  { %v93_v58 = vadd.f32 %v158_v55, %v92_v54  ;;  %v162_v62 = vpop.eup %161 }
  0xba   :  { %v164_v1 = vpop.eup %163 }
  0xbb   :  { %v94_v61 = vadd.f32 %v160_v59, %v93_v58  ;;  %v166_v3 = vpop.eup %165 }
  0xbc   :  { %v168_v5 = vpop.eup %167 }
  0xbd   :  { %v95_v0 = vadd.f32 %v162_v62, %v94_v61  ;;  %v170_v7 = vpop.eup %169 }
  0xbe   :  { %v172_v9 = vpop.eup %171 }
  0xbf   :  { %v96_v2 = vadd.f32 %v164_v1, %v95_v0  ;;  %v174_v11 = vpop.eup %173 }
  0xc0   :  { %v176_v13 = vpop.eup %175 }
  0xc1   :  { %v97_v4 = vadd.f32 %v166_v3, %v96_v2  ;;  %v178_v15 = vpop.eup %177 }
  0xc2   :  { %v180_v17 = vpop.eup %179 }
  0xc3   :  { %v98_v6 = vadd.f32 %v168_v5, %v97_v4 }
  0xc5   :  { %v99_v8 = vadd.f32 %v170_v7, %v98_v6 }
  0xc7   :  { %v100_v10 = vadd.f32 %v172_v9, %v99_v8 }
  0xc9   :  { %v101_v12 = vadd.f32 %v174_v11, %v100_v10 }
  0xcb   :  { %v102_v14 = vadd.f32 %v176_v13, %v101_v12 }
  0xcd   :  { %v103_v16 = vadd.f32 %v178_v15, %v102_v14 }
  0xcf   :  { %v104_v18 = vadd.f32 %v180_v17, %v103_v16 }
  0xd1   :  { %105 = vadd.xlane.f32.xlu0 %v104_v18 }
 0x15a   :  { %v106_v19 = vpop.xlane.xlu0 %105 }
 0x15b   :  { %181 = vrcp.f32 %v106_v19 }
 0x168   :  { %v182_v20 = vpop.eup %181 }
 0x169   :  { %v108_v21 = vmul.f32 %v182_v20, %v154_v48  ;;  %v109_v22 = vmul.f32 %v182_v20, %v156_v51  ;;  %v110_v23 = vmul.f32 %v182_v20, %v158_v55  ;;  %v111_v24 = vmul.f32 %v182_v20, %v160_v59 }
 0x16a   :  { %v112_v25 = vmul.f32 %v182_v20, %v162_v62  ;;  %v113_v26 = vmul.f32 %v182_v20, %v164_v1  ;;  %v114_v27 = vmul.f32 %v182_v20, %v166_v3  ;;  %v115_v28 = vmul.f32 %v182_v20, %v168_v5 }
 0x16b   :  { %v116_v29 = vmul.f32 %v182_v20, %v170_v7  ;;  %v117_v30 = vmul.f32 %v182_v20, %v172_v9  ;;  %v118_v31 = vmul.f32 %v182_v20, %v174_v11  ;;  %v119_v32 = vmul.f32 %v182_v20, %v176_v13  ;;  %122 = vst [vmem:[#allocation5] sm:$0xff] %v108_v21 }
 0x16c   :  { %123 = vst [vmem:[#allocation5 + $0x8] sm:$0xff] %v109_v22  ;;  %124 = vst [vmem:[#allocation5 + $0x10] sm:$0xff] %v110_v23  ;;  %v120_v33 = vmul.f32 %v182_v20, %v178_v15  ;;  %v121_v34 = vmul.f32 %v182_v20, %v180_v17 }
 0x16d   :  { %125 = vst [vmem:[#allocation5 + $0x18] sm:$0xff] %v111_v24  ;;  %126 = vst [vmem:[#allocation5 + $0x20] sm:$0xff] %v112_v25 }
 0x16e   :  { %127 = vst [vmem:[#allocation5 + $0x28] sm:$0xff] %v113_v26  ;;  %128 = vst [vmem:[#allocation5 + $0x30] sm:$0xff] %v114_v27 }
 0x16f   :  { %129 = vst [vmem:[#allocation5 + $0x38] sm:$0xff] %v115_v28  ;;  %130 = vst [vmem:[#allocation5 + $0x40] sm:$0xff] %v116_v29 }
 0x170   :  { %131 = vst [vmem:[#allocation5 + $0x48] sm:$0xff] %v117_v30  ;;  %132 = vst [vmem:[#allocation5 + $0x50] sm:$0xff] %v118_v31 }
 0x171   :  { %133 = vst [vmem:[#allocation5 + $0x58] sm:$0xff] %v119_v32  ;;  %134 = vst [vmem:[#allocation5 + $0x60] sm:$0xff] %v120_v33 }
 0x172   :  { %135 = vst [vmem:[#allocation5 + $0x68] sm:$0xff] %v121_v34 }
 0x173   :  { %214 = shalt.err (!%p211_p9)
}
 0x174   :  { %145 = dma.vmem_to_hbm [thread:$0]  %s143_s11, 1792, %s246_s1, [#allocation4]  }
 0x175   :  { %225 = dma.done.wait [#allocation4], 1792  }
 0x176   :  { %226 = vsyncadd [#allocation4], 4294965504 }
 0x177   :  { %149 = vsyncpa [#allocation3], 1 }
 0x178   :  { %150 = vsyncpa [#allocation4], 1 }

</bundles_post_ra>
